<compile_context>
chip_gen: v5e
topology: v5e:2x2
jax: 0.10.0
libtpu: 0.0.40
codegen_flags: <defaults>
</compile_context>

<pallas_src>
import math

import jax
import jax.numpy as jnp
from jax.experimental import pallas as pl
from jax.experimental.pallas import tpu as pltpu


def _round_up(x, m):
    return ((x + m - 1) // m) * m


def _cdiv(a, b):
    return -(-a // b)


def _default_num_splits():
    """2 on v7x (2 TensorCores/chip), else 1 (v5e / v6e are single-core)."""
    try:
        kind = jax.devices()[0].device_kind.lower()
        if "v7" in kind:
            return 2
    except Exception:
        pass
    return 1


def mi_forward(x, W, b, labels, mask_bool, *, privates, tile_n=None, n_splits=None):
    """Pallas MI forward.  Returns a scalar float32 (matches the PyTorch module).

    x       : (N, H) features (f32 or bf16 -- streamed as given, no wrapper copy)
    W, b    : (H, P), (P,) private-head parameters (forward_attached() == x @ W + b)
    labels  : (N,) int private labels in [0, P)
    mask_bool: (N,) boolean row mask
    """
    N, H = x.shape
    P = privates
    assert W.shape == (H, P) and b.shape == (P,)

    if n_splits is None:
        n_splits = _default_num_splits()
    # Never split more than there are 128-row chunks of work.
    n_splits = max(1, min(n_splits, _cdiv(N, 128)))
    rows_per_split = _cdiv(N, n_splits)

    # --- Tile sizing from a VMEM budget (adaptive to H and x dtype). ---------------
    itemsize = jnp.dtype(x.dtype).itemsize
    row_stream_bytes = 2 * H * itemsize          # double-buffered x rows
    row_temp_bytes = 8 * 128 * 4                 # lane-padded f32 softmax / one-hot temps
    tile_budget_bytes = 24 * 1024 * 1024
    tile_from_budget = max(128, (tile_budget_bytes // (row_stream_bytes + row_temp_bytes)) // 128 * 128)
    eff_tile = min(tile_from_budget, _round_up(rows_per_split, 128))
    if tile_n is not None:
        eff_tile = min(eff_tile, max(128, _round_up(tile_n, 128)))
    steps = _cdiv(rows_per_split, eff_tile)
    n_pad = n_splits * steps * eff_tile          # logical (grid) row extent; x itself is NOT padded

    # Scoped-VMEM estimate: x double buffer + temps + resident (double-buffered) W + labels.
    vmem_est = (eff_tile * (row_stream_bytes + row_temp_bytes)
                + 2 * H * 128 * jnp.dtype(W.dtype).itemsize
                + 2 * eff_tile * 4
                + (1 << 20))
    vmem_limit = int(min(64 * 1024 * 1024, max(2 * vmem_est, 32 * 1024 * 1024)))

    # W/b are tiny -- cast W to x's dtype so the matmul has uniform operand dtype.
    w_in = W.astype(x.dtype)
    b2 = b.reshape(1, P).astype(jnp.float32)

    # Fold the boolean row mask into the labels with an out-of-range sentinel; also pad
    # the (cheap, int32) label stream to the grid extent with the same sentinel.  A
    # sentinel row's one-hot column is identically zero -> it contributes nothing,
    # exactly like tensor[mask, :] in the PyTorch module.
    lbl_eff = jnp.where(mask_bool, labels.astype(jnp.int32), jnp.int32(P))
    lbl_p = jnp.full((1, n_pad), P, jnp.int32).at[0, :N].set(lbl_eff)

    def _mi_counts_kernel(x_ref, w_ref, b_ref, lbl_ref, out_ref):
        """Accumulate un-normalized joint counts  onehot(label)^T @ softmax(x @ W + b).

        Grid: (n_splits [parallel], steps [arbitrary / reduction]).
          x_ref   : (TN, H)   feature tile (last tile may contain out-of-range garbage rows)
          w_ref   : (H, P)    head weights (resident)
          b_ref   : (1, P)    f32 head bias (resident)
          lbl_ref : (1, TN)   int32 labels, lane-dense; masked / padded rows carry sentinel P
          out_ref : (1, P, P) f32 per-split joint-count accumulator (resident across steps)
        """
        split = pl.program_id(0)
        step = pl.program_id(1)
        tn = x_ref.shape[0]
        p = w_ref.shape[1]

        @pl.when(step == 0)
        def _():
            out_ref[...] = jnp.zeros_like(out_ref)

        # private head forward_attached(): logits = x @ W + b   (MXU, f32 accumulate)
        logits = jnp.dot(x_ref[...], w_ref[...],
                         preferred_element_type=jnp.float32) + b_ref[...]

        # Ragged-tail guard: rows beyond N were never written by the caller, so their
        # logits may be garbage (inf/NaN).  Zero them BEFORE exp so prob stays finite;
        # the label sentinel already zeroes their contribution to the counts.
        row0 = (split * pl.num_programs(1) + step) * tn
        rows = row0 + jax.lax.broadcasted_iota(jnp.int32, (tn, 1), 0)
        logits = jnp.where(rows < N, logits, 0.0)

        # softmax over classes (lane dim), all f32; approx reciprocal = single EUP vrcp
        # (nb is derived from the mask in the wrapper, so this cannot bias normalization).
        m = jnp.max(logits, axis=1, keepdims=True)
        e = jnp.exp(logits - m)
        prob = e * pl.reciprocal(jnp.sum(e, axis=1, keepdims=True), approx=True)

        # Transposed one-hot built directly in (P, TN): native [P,TN] @ [TN,P] on the MXU
        # (no relayout of the contracted dim); labels stay lane-dense.
        cls = jax.lax.broadcasted_iota(jnp.int32, (p, tn), 0)
        onehot_t = (cls == lbl_ref[...]).astype(jnp.float32)

        counts = jax.lax.dot_general(
            onehot_t, prob, (((1,), (0,)), ((), ())),
            preferred_element_type=jnp.float32)
        out_ref[...] += counts[None, :, :]

    counts = pl.pallas_call(
        _mi_counts_kernel,
        out_shape=jax.ShapeDtypeStruct((n_splits, P, P), jnp.float32),
        grid_spec=pltpu.PrefetchScalarGridSpec(
            num_scalar_prefetch=0,
            grid=(n_splits, steps),
            in_specs=[
                pl.BlockSpec((eff_tile, H), lambda c, i: (c * steps + i, 0)),  # x tile (streamed)
                pl.BlockSpec((H, P), lambda c, i: (0, 0)),                     # W (resident)
                pl.BlockSpec((1, P), lambda c, i: (0, 0)),                     # b (resident)
                pl.BlockSpec((1, eff_tile), lambda c, i: (0, c * steps + i)),  # labels (lane-dense)
            ],
            out_specs=pl.BlockSpec((1, P, P), lambda c, i: (c, 0, 0)),
        ),
        compiler_params=pltpu.CompilerParams(
            dimension_semantics=("parallel", "arbitrary"),
            vmem_limit_bytes=vmem_limit),
    )(x, w_in, b2, lbl_p)

    # --- Tiny (P, P) finalize in plain JAX (keeps the split axis fully parallel). ---
    counts = jnp.sum(counts, axis=0)
    # nb from the mask (exact) == sum of the masked one-hot, as in the PyTorch module.
    nb = jnp.sum(mask_bool.astype(jnp.float32))
    # TODO(synk): an all-False mask gives nb == 0 -> NaN; same hazard as the PyTorch reference.
    joint = jnp.maximum(counts, 1e-15) / nb
    marg_out = jnp.sum(joint, axis=0, keepdims=True)   # (1, P)
    marg_gt = jnp.sum(joint, axis=1, keepdims=True)    # (P, 1)
    marginals = jnp.maximum(marg_gt * marg_out, 1e-15)
    return jnp.sum(joint * jnp.log(joint / marginals)) * (1.0 / math.log(privates))


def mi_reference(x, W, b, labels, mask_bool, privates):
    """Pure-JAX reference mirroring the PyTorch semantics (boolean row selection)."""
    logits = jnp.dot(x.astype(jnp.float32), W.astype(jnp.float32),
                     precision=jax.lax.Precision.HIGHEST) + b
    prob = jax.nn.softmax(logits, axis=1)
    onehot = jax.nn.one_hot(labels, privates, dtype=jnp.float32)
    # Row selection == zeroing unselected rows (they contribute nothing to mm / nb).
    oh_m = jnp.where(mask_bool[:, None], onehot, 0.0)
    pr_m = jnp.where(mask_bool[:, None], prob, 0.0)
    nb = jnp.sum(oh_m)
    joint = jnp.maximum(
        jnp.dot(oh_m.T, pr_m, precision=jax.lax.Precision.HIGHEST), 1e-15) / nb
    marg_out = jnp.sum(joint, axis=0, keepdims=True)
    marg_gt = jnp.sum(joint, axis=1, keepdims=True)
    marg = jnp.maximum(
        jnp.dot(marg_gt, marg_out, precision=jax.lax.Precision.HIGHEST), 1e-15)
    return jnp.sum(joint * jnp.log(joint / marg)) * (1.0 / math.log(privates))


if __name__ == "__main__":
    N, H, P = 64, 32, 10  # samples, hidden dim, privates (classes)

    key = jax.random.PRNGKey(0)
    k1, k2, k3, k4, k5 = jax.random.split(key, 5)
    x = jax.random.normal(k1, (N, H), jnp.float32)
    W = jax.random.normal(k2, (H, P), jnp.float32) * 0.5   # deterministic head weights
    b = jax.random.normal(k3, (P,), jnp.float32) * 0.1     # deterministic head bias
    labels = jax.random.randint(k4, (N,), 0, P, jnp.int32)
    mask_bool = jax.random.bernoulli(k5, 0.7, (N,))

    out = mi_forward(x, W, b, labels, mask_bool, privates=P)
    out = jax.block_until_ready(out)

    ref = mi_reference(x, W, b, labels, mask_bool, P)
    # Tolerance accounts for the in-kernel approximate (EUP) softmax reciprocal.
    assert jnp.allclose(out, ref, rtol=2e-2, atol=2e-3), (float(out), float(ref))
    print("KERNEL_OK")
</pallas_src>

<mosaic_0001>
module attributes {stable_mosaic.version = 11 : i64} {
  func.func @_mi_counts_kernel(%arg0: i32, %arg1: i32, %arg2: memref<128x32xf32, #tpu.memory_space<vmem>>, %arg3: memref<32x10xf32, #tpu.memory_space<vmem>>, %arg4: memref<1x10xf32, #tpu.memory_space<vmem>>, %arg5: memref<1x128xi32, #tpu.memory_space<vmem>>, %arg6: memref<1x10x10xf32, #tpu.memory_space<vmem>>) attributes {dimension_semantics = [#tpu.dimension_semantics<parallel>, #tpu.dimension_semantics<arbitrary>], iteration_bounds = array<i64: 1, 1>, scalar_prefetch = 0 : i64, scratch_operands = 0 : i64, tpu.core_type = #tpu.core_type<tc>, window_params = [{transform_indices = @transform_0, window_bounds = array<i64: 128, 32>}, {pipeline_mode = #tpu.pipeline_mode<synchronous>, transform_indices = @transform_1, window_bounds = array<i64: 32, 10>}, {pipeline_mode = #tpu.pipeline_mode<synchronous>, transform_indices = @transform_2, window_bounds = array<i64: 1, 10>}, {transform_indices = @transform_3, window_bounds = array<i64: 1, 128>}, {transform_indices = @transform_4, window_bounds = array<i64: 1, 10, 10>}]} {
    %c0_i32 = arith.constant 0 : i32
    %0 = arith.cmpi eq, %arg1, %c0_i32 : i32
    %1 = arith.extui %0 : i1 to i32
    %c0_i32_0 = arith.constant 0 : i32
    %2 = arith.cmpi ne, %1, %c0_i32_0 : i32
    scf.if %2 {
      %cst_18 = arith.constant 0.000000e+00 : f32
      %42 = vector.broadcast %cst_18 : f32 to vector<1x10x10xf32>
      %c0_19 = arith.constant 0 : index
      %c0_20 = arith.constant 0 : index
      %c0_21 = arith.constant 0 : index
      %43 = vector.load %arg6[%c0_19, %c0_20, %c0_21] : memref<1x10x10xf32, #tpu.memory_space<vmem>>, vector<1x10x10xf32>
      tpu.vector_store %arg6[%c0_19, %c0_20, %c0_21], %42 {strides = array<i32>} : memref<1x10x10xf32, #tpu.memory_space<vmem>>, vector<1x10x10xf32>,
    } else {
    }
    %c0 = arith.constant 0 : index
    %c0_1 = arith.constant 0 : index
    %3 = vector.load %arg2[%c0, %c0_1] : memref<128x32xf32, #tpu.memory_space<vmem>>, vector<128x32xf32>
    %c0_2 = arith.constant 0 : index
    %c0_3 = arith.constant 0 : index
    %4 = vector.load %arg3[%c0_2, %c0_3] : memref<32x10xf32, #tpu.memory_space<vmem>>, vector<32x10xf32>
    %cst = arith.constant dense<0.000000e+00> : vector<128x10xf32>
    %5 = tpu.matmul %3, %4, %cst {dimension_numbers = #tpu.dot_dimension_numbers<[1], [0], [0], [1], [0, 0, 1, 1], [], []>} : vector<128x32xf32>, vector<32x10xf32>, vector<128x10xf32> -> vector<128x10xf32>
    %c0_4 = arith.constant 0 : index
    %c0_5 = arith.constant 0 : index
    %6 = vector.load %arg4[%c0_4, %c0_5] : memref<1x10xf32, #tpu.memory_space<vmem>>, vector<1x10xf32>
    %7 = vector.broadcast %6 : vector<1x10xf32> to vector<128x10xf32>
    %8 = arith.addf %5, %7 : vector<128x10xf32>
    %c1_i32 = arith.constant 1 : i32
    %9 = arith.muli %arg0, %c1_i32 : i32
    %10 = arith.addi %9, %arg1 : i32
    %c128_i32 = arith.constant 128 : i32
    %11 = arith.muli %10, %c128_i32 : i32
    %12 = tpu.iota {dimensions = array<i32: 0>} : vector<128x1xi32>
    %13 = vector.broadcast %11 : i32 to vector<128x1xi32>
    %14 = arith.addi %13, %12 : vector<128x1xi32>
    %c64_i32 = arith.constant 64 : i32
    %15 = vector.broadcast %c64_i32 : i32 to vector<128x1xi32>
    %16 = arith.cmpi slt, %14, %15 : vector<128x1xi32>
    %cst_6 = arith.constant 0.000000e+00 : f32
    %17 = vector.shape_cast %16 : vector<128x1xi1> to vector<128x1xi1>
    %18 = vector.broadcast %17 : vector<128x1xi1> to vector<128x10xi1>
    %19 = vector.broadcast %cst_6 : f32 to vector<128x10xf32>
    %20 = arith.select %18, %8, %19 : vector<128x10xi1>, vector<128x10xf32>
    %cst_7 = arith.constant dense<0xFF800000> : vector<128xf32>
    %21 = vector.multi_reduction <maximumf>, %20, %cst_7 [1] : vector<128x10xf32> to vector<128xf32>
    %22 = vector.shape_cast %21 : vector<128xf32> to vector<128x1xf32>
    %23 = vector.broadcast %22 : vector<128x1xf32> to vector<128x10xf32>
    %24 = arith.subf %20, %23 : vector<128x10xf32>
    %25 = math.exp %24 : vector<128x10xf32>
    %cst_8 = arith.constant dense<0.000000e+00> : vector<128xf32>
    %26 = vector.multi_reduction <add>, %25, %cst_8 [1] : vector<128x10xf32> to vector<128xf32>
    %27 = vector.shape_cast %26 : vector<128xf32> to vector<128x1xf32>
    %28 = tpu.reciprocal %27 {approx = true} : vector<128x1xf32> -> vector<128x1xf32>
    %29 = vector.broadcast %28 : vector<128x1xf32> to vector<128x10xf32>
    %30 = arith.mulf %25, %29 : vector<128x10xf32>
    %31 = tpu.iota {dimensions = array<i32: 0>} : vector<10x128xi32>
    %c0_9 = arith.constant 0 : index
    %c0_10 = arith.constant 0 : index
    %32 = vector.load %arg5[%c0_9, %c0_10] : memref<1x128xi32, #tpu.memory_space<vmem>>, vector<1x128xi32>
    %33 = vector.broadcast %32 : vector<1x128xi32> to vector<10x128xi32>
    %34 = arith.cmpi eq, %31, %33 : vector<10x128xi32>
    %35 = arith.extui %34 : vector<10x128xi1> to vector<10x128xi32>
    %36 = arith.sitofp %35 : vector<10x128xi32> to vector<10x128xf32>
    %cst_11 = arith.constant dense<0.000000e+00> : vector<10x10xf32>
    %37 = tpu.matmul %36, %30, %cst_11 {dimension_numbers = #tpu.dot_dimension_numbers<[1], [0], [0], [1], [0, 0, 1, 1], [], []>} : vector<10x128xf32>, vector<128x10xf32>, vector<10x10xf32> -> vector<10x10xf32>
    %c0_12 = arith.constant 0 : index
    %c0_13 = arith.constant 0 : index
    %c0_14 = arith.constant 0 : index
    %38 = vector.load %arg6[%c0_12, %c0_13, %c0_14] : memref<1x10x10xf32, #tpu.memory_space<vmem>>, vector<1x10x10xf32>
    %39 = vector.shape_cast %37 : vector<10x10xf32> to vector<1x10x10xf32>
    %40 = arith.addf %38, %39 : vector<1x10x10xf32>
    %c0_15 = arith.constant 0 : index
    %c0_16 = arith.constant 0 : index
    %c0_17 = arith.constant 0 : index
    %41 = vector.load %arg6[%c0_15, %c0_16, %c0_17] : memref<1x10x10xf32, #tpu.memory_space<vmem>>, vector<1x10x10xf32>
    tpu.vector_store %arg6[%c0_15, %c0_16, %c0_17], %40 {strides = array<i32>} : memref<1x10x10xf32, #tpu.memory_space<vmem>>, vector<1x10x10xf32>,
    return
  }
  func.func @transform_0(%arg0: i32, %arg1: i32) -> (i32, i32) {
    %c1_i32 = arith.constant 1 : i32
    %0 = arith.muli %arg0, %c1_i32 : i32
    %1 = arith.addi %0, %arg1 : i32
    %c0_i32 = arith.constant 0 : i32
    %c0_i32_0 = arith.constant 0 : i32
    return %1, %c0_i32 : i32, i32
  }
  func.func @transform_1(%arg0: i32, %arg1: i32) -> (i32, i32) {
    %c0_i32 = arith.constant 0 : i32
    %c0_i32_0 = arith.constant 0 : i32
    %c0_i32_1 = arith.constant 0 : i32
    return %c0_i32, %c0_i32_0 : i32, i32
  }
  func.func @transform_2(%arg0: i32, %arg1: i32) -> (i32, i32) {
    %c0_i32 = arith.constant 0 : i32
    %c0_i32_0 = arith.constant 0 : i32
    %c0_i32_1 = arith.constant 0 : i32
    return %c0_i32, %c0_i32_0 : i32, i32
  }
  func.func @transform_3(%arg0: i32, %arg1: i32) -> (i32, i32) {
    %c1_i32 = arith.constant 1 : i32
    %0 = arith.muli %arg0, %c1_i32 : i32
    %1 = arith.addi %0, %arg1 : i32
    %c0_i32 = arith.constant 0 : i32
    %c0_i32_0 = arith.constant 0 : i32
    return %c0_i32, %1 : i32, i32
  }
  func.func @transform_4(%arg0: i32, %arg1: i32) -> (i32, i32, i32) {
    %c0_i32 = arith.constant 0 : i32
    %c0_i32_0 = arith.constant 0 : i32
    %c0_i32_1 = arith.constant 0 : i32
    return %arg0, %c0_i32, %c0_i32_0 : i32, i32, i32
  }
}

</mosaic_0001>

<bundles_post_ra>
// kernel: tpu_custom_call.1
= control target key start
LH: loop header
LB: loop body
LE: loop exit
PB: predicated region body
PF: predicated region fallthrough
CT: control target
= control target key end

     0   :  { %vm67_vm0 = vcmask 80896   ;;  %v634_v2 = vmov -inf   ;;  %vm95_vm1 = vcmask 261120   ;;  %vm69_vm4 = vcmask 74752   ;;  %s885_s1 = inlined_call_operand.vmem [shape: f32[32,10], index: 1, kind: input, shape index: {}]   ;;  %s886_s0 = inlined_call_operand.vmem [shape: f32[64,32], index: 0, kind: input, shape index: {}]   ;;  %s887_s2 = inlined_call_operand.vmem [shape: f32[1,10], index: 2, kind: input, shape index: {}]   ;;  %s888_s3 = inlined_call_operand.vmem [shape: s32[1,128], index: 3, kind: input, shape index: {}]   ;;  %s889_s4 = inlined_call_operand.vmem [shape: f32[1,10,10], index: 4, kind: output, shape index: {}]  }
   0x1   :  { %v90_v0 = vld [vmem:[%s885_s1 + $0x18] sm:$0xff]  ;;  %v89_v1 = vld [vmem:[%s885_s1 + $0x10] sm:$0xff]  ;;  %v334_v3 = vsel %vm67_vm0, 0.0, %v634_v2  ;;  %v88_v4 = vld [vmem:[%s885_s1 + $0x8] sm:$0xff] }
   0x2   :  { %156 = vmatpush.msra.mxu0 %v90_v0  ;;  %557 = vmatpush.msra.mxu2 %v90_v0  ;;  %v87_v5 = vld [vmem:[%s885_s1] sm:$0xff]  ;;  %v76_v7 = vld [vmem:[%s886_s0 + $0x28] sm:$0xff]  ;;  %v77_v9 = vld [vmem:[%s886_s0 + $0x30] sm:$0xff] }
   0x3   :  { %350 = vmax.xlane.f32.xlu1 %v334_v3  ;;  %356 = vmax.xlane.f32.xlu0 %v334_v3  ;;  %v71_v6 = vld [vmem:[%s886_s0] sm:$0xff]  ;;  %v72_v8 = vld [vmem:[%s886_s0 + $0x8] sm:$0xff]  ;;  %v73_v10 = vld [vmem:[%s886_s0 + $0x10] sm:$0xff] }
   0x4   :  { %157 = vmatpush.msra.mxu0 %v89_v1  ;;  %559 = vmatpush.msra.mxu2 %v89_v1  ;;  %v78_v11 = vld [vmem:[%s886_s0 + $0x38] sm:$0xff]  ;;  %v75_v13 = vld [vmem:[%s886_s0 + $0x20] sm:$0xff] }
   0x5   :  { %344 = vmax.xlane.f32.xlu2 %v334_v3  ;;  %558 = vmatpush.msra.mxu3 %v90_v0  ;;  %v74_v12 = vld [vmem:[%s886_s0 + $0x18] sm:$0xff]  ;;  %v568_v17 = vld [vmem:[%s887_s2] ss:$0 sm:$0xff] }
   0x6   :  { %158 = vmatpush.msra.mxu0 %v88_v4  ;;  %561 = vmatpush.msra.mxu2 %v88_v4 }
   0x7   :  { %560 = vmatpush.msra.mxu3 %v89_v1 }
   0x8   :  { %159 = vmatpush.msra.mxu0 %v87_v5  ;;  %563 = vmatpush.msra.mxu2 %v87_v5 }
   0x9   :  { %537 = vmatmul.msk.f32.vlgmr.msra.gmra.mxu0 %vm95_vm1, %v71_v6  ;;  %542 = vmatmul.msk.f32.vlgmr.msra.gmra.mxu2 %vm95_vm1, %v76_v7 }
   0xa   :  { %562 = vmatpush.msra.mxu3 %v88_v4 }
   0xb   :  { %347 = vmax.xlane.f32.xlu1 %v334_v3  ;;  %353 = vmax.xlane.f32.xlu0 %v334_v3 }
   0xc   :  { %564 = vmatpush.msra.mxu3 %v87_v5 }
   0xd   :  { %341 = vmax.xlane.f32.xlu2 %v334_v3 }
  0x11   :  { %538 = vmatmul.msk.f32.gmra.mxu0 %vm95_vm1, %v72_v8  ;;  %543 = vmatmul.msk.f32.gmra.mxu2 %vm95_vm1, %v77_v9 }
  0x13   :  { %338 = vmax.xlane.f32.xlu0 %v334_v3  ;;  %335 = vmax.xlane.f32.xlu1 %v334_v3 }
  0x19   :  { %539 = vmatmul.msk.f32.gmra.mxu0 %vm95_vm1, %v73_v10  ;;  %544 = vmatmul.msk.f32.gmra.mxu2 %vm95_vm1, %v78_v11 }
  0x21   :  { %540 = vmatmul.msk.f32.gmra.mxu0 %vm95_vm1, %v74_v12 }
  0x29   :  { %541 = vmatmul.msk.f32.gmra.mxu0 %vm95_vm1, %v75_v13 }
  0x76   :  { %v357_v15 = vpop.xlane.xlu0 %356  ;;  %v351_v16 = vpop.xlane.xlu1 %350 }
  0x77   :  { %v373_v21 = vsub.f32 0.0, %v357_v15  ;;  %v371_v41 = vsub.f32 0.0, %v351_v16 }
  0x78   :  { %v345_v34 = vpop.xlane.xlu2 %344 }
  0x79   :  { %v404_v24 = vmul.f32 1.442695, %v373_v21  ;;  %v400_v47 = vmul.f32 1.442695, %v371_v41  ;;  %v369_v63 = vsub.f32 0.0, %v345_v34 }
  0x7b   :  { %570 = vpow2.f32 %v404_v24  ;;  %v396_v3 = vmul.f32 1.442695, %v369_v63 }
  0x7e   :  { %v354_v23 = vpop.xlane.xlu0 %353  ;;  %v348_v25 = vpop.xlane.xlu1 %347 }
  0x7f   :  { %v370_v29 = vsub.f32 0.0, %v348_v25  ;;  %v372_v51 = vsub.f32 0.0, %v354_v23 }
  0x80   :  { %v342_v49 = vpop.xlane.xlu2 %341 }
  0x81   :  { %v398_v33 = vmul.f32 1.442695, %v370_v29  ;;  %v722_v36 = vpop.eup %570  ;;  %v368_v55 = vsub.f32 0.0, %v342_v49  ;;  %v402_v57 = vmul.f32 1.442695, %v372_v51 }
  0x82   :  { %v451_v44 = vsel %vm67_vm0, %v722_v36, 0.0 }
  0x83   :  { %572 = vpow2.f32 %v398_v33  ;;  %v394_v59 = vmul.f32 1.442695, %v368_v55 }
  0x86   :  { %v161_v14 = vpop.f32.mrf.mxu0  ;;  %v339_v35 = vpop.xlane.xlu0 %338 }
  0x87   :  { %v367_v40 = vsub.f32 0.0, %v339_v35  ;;  %v736_v50 = vadd.f32 %v568_v17, %v161_v14  ;;  %v336_v4 = vpop.xlane.xlu1 %335 }
  0x88   :  { %v366_v7 = vsub.f32 0.0, %v336_v4 }
  0x89   :  { %v392_v46 = vmul.f32 1.442695, %v367_v40  ;;  %v734_v48 = vpop.eup %572  ;;  %v310_v58 = vsel %vm67_vm0, %v736_v50, -inf }
  0x8a   :  { %v442_v54 = vsel %vm67_vm0, %v734_v48, 0.0  ;;  %v390_v10 = vmul.f32 1.442695, %v366_v7 }
  0x8b   :  { %574 = vpow2.f32 %v392_v46 }
  0x8c   :  { %v176_v18 = vpop.f32.mrf.mxu2  ;;  %576 = vpow2.f32 %v400_v47 }
  0x8d   :  { %v710_v19 = vadd.f32 %v568_v17, %v176_v18  ;;  %578 = vpow2.f32 %v402_v57 }
  0x8e   :  { %v164_v20 = vpop.f32.mrf.mxu0  ;;  %580 = vpow2.f32 %v394_v59 }
  0x8f   :  { %v325_v22 = vsel %vm67_vm0, %v710_v19, -inf  ;;  %v750_v62 = vadd.f32 %v568_v17, %v164_v20  ;;  %582 = vpow2.f32 %v396_v3 }
  0x90   :  { %326 = vmax.xlane.f32.xlu1 %v325_v22  ;;  %584 = vpow2.f32 %v390_v10 }
  0x91   :  { %v746_v60 = vpop.eup %574  ;;  %v313_v2 = vsel %vm67_vm0, %v750_v62, -inf }
  0x92   :  { %v748_v61 = vpop.eup %576  ;;  %v433_v0 = vsel %vm67_vm0, %v746_v60, 0.0 }
  0x93   :  { %v445_v1 = vsel %vm67_vm0, %v748_v61, 0.0  ;;  %v758_v5 = vpop.eup %578 }
  0x94   :  { %v179_v26 = vpop.f32.mrf.mxu2  ;;  %v760_v6 = vpop.eup %580  ;;  %v448_v8 = vsel %vm67_vm0, %v758_v5, 0.0 }
  0x95   :  { %v714_v27 = vadd.f32 %v568_v17, %v179_v26  ;;  %v436_v9 = vsel %vm67_vm0, %v760_v6, 0.0  ;;  %v766_v11 = vpop.eup %582 }
  0x96   :  { %v167_v28 = vpop.f32.mrf.mxu0  ;;  %v439_v12 = vsel %vm67_vm0, %v766_v11, 0.0  ;;  %v770_v13 = vpop.eup %584 }
  0x97   :  { %v716_v30 = vadd.f32 %v568_v17, %v167_v28  ;;  %v328_v31 = vsel %vm67_vm0, %v714_v27, -inf  ;;  %v430_v14 = vsel %vm67_vm0, %v770_v13, 0.0 }
  0x98   :  { %329 = vmax.xlane.f32.xlu0 %v328_v31 }
  0x99   :  { %v316_v32 = vsel %vm67_vm0, %v716_v30, -inf }
  0x9a   :  { %317 = vmax.xlane.f32.xlu1 %v316_v32 }
  0x9c   :  { %v182_v37 = vpop.f32.mrf.mxu2 }
  0x9d   :  { %v724_v38 = vadd.f32 %v568_v17, %v182_v37 }
  0x9e   :  { %v170_v39 = vpop.f32.mrf.mxu0 }
  0x9f   :  { %v726_v42 = vadd.f32 %v568_v17, %v170_v39  ;;  %v331_v43 = vsel %vm67_vm0, %v724_v38, -inf }
  0xa0   :  { %332 = vmax.xlane.f32.xlu2 %v331_v43 }
  0xa1   :  { %v319_v45 = vsel %vm67_vm0, %v726_v42, -inf }
  0xa2   :  { %320 = vmax.xlane.f32.xlu0 %v319_v45  ;;  %452 = vadd.xlane.f32.xlu1 %v451_v44 }
  0xa6   :  { %v173_v52 = vpop.f32.mrf.mxu0 }
  0xa7   :  { %v738_v53 = vadd.f32 %v568_v17, %v173_v52 }
  0xa9   :  { %v322_v56 = vsel %vm67_vm0, %v738_v53, -inf }
  0xaa   :  { %323 = vmax.xlane.f32.xlu2 %v322_v56  ;;  %443 = vadd.xlane.f32.xlu1 %v442_v54 }
  0xab   :  { %311 = vmax.xlane.f32.xlu0 %v310_v58 }
  0xb2   :  { %434 = vadd.xlane.f32.xlu1 %v433_v0  ;;  %314 = vmax.xlane.f32.xlu2 %v313_v2 }
  0xb3   :  { %446 = vadd.xlane.f32.xlu0 %v445_v1 }
  0xba   :  { %449 = vadd.xlane.f32.xlu2 %v448_v8 }
  0xbb   :  { %437 = vadd.xlane.f32.xlu0 %v436_v9 }
  0xc2   :  { %440 = vadd.xlane.f32.xlu2 %v439_v12 }
  0xca   :  { %431 = vadd.xlane.f32.xlu2 %v430_v14 }
 0x103   :  { %v327_v15 = vpop.xlane.xlu1 %326 }
 0x104   :  { %v363_v16 = vsub.f32 %v710_v19, %v327_v15 }
 0x106   :  { %v384_v17 = vmul.f32 1.442695, %v363_v16 }
 0x108   :  { %586 = vpow2.f32 %v384_v17 }
 0x10b   :  { %v330_v18 = vpop.xlane.xlu0 %329 }
 0x10c   :  { %v364_v20 = vsub.f32 %v714_v27, %v330_v18 }
 0x10d   :  { %v318_v21 = vpop.xlane.xlu1 %317 }
 0x10e   :  { %v776_v22 = vpop.eup %586  ;;  %v386_v23 = vmul.f32 1.442695, %v364_v20  ;;  %v360_v24 = vsub.f32 %v716_v30, %v318_v21  ;;  %v85_v21 = vld [vmem:[%s886_s0 + $0x70] sm:$0xff] }
 0x10f   :  { %v421_v25 = vsel %vm67_vm0, %v776_v22, 0.0 }
 0x110   :  { %588 = vpow2.f32 %v386_v23  ;;  %v378_v26 = vmul.f32 1.442695, %v360_v24  ;;  %422 = vadd.xlane.f32.xlu2 %v421_v25 }
 0x112   :  { %590 = vpow2.f32 %v378_v26  ;;  %v81_v26 = vld [vmem:[%s886_s0 + $0x50] sm:$0xff] }
 0x113   :  { %v333_v28 = vpop.xlane.xlu2 %332 }
 0x114   :  { %v365_v19 = vsub.f32 %v724_v38, %v333_v28  ;;  %v86_v28 = vld [vmem:[%s886_s0 + $0x78] sm:$0xff] }
 0x115   :  { %v321_v29 = vpop.xlane.xlu0 %320  ;;  %v453_v31 = vpop.xlane.xlu1 %452 }
 0x116   :  { %v782_v32 = vpop.eup %588  ;;  %v388_v27 = vmul.f32 1.442695, %v365_v19  ;;  %v361_v33 = vsub.f32 %v726_v42, %v321_v29  ;;  %592 = vrcp.f32 %v453_v31 }
 0x117   :  { %v424_v30 = vsel %vm67_vm0, %v782_v32, 0.0 }
 0x118   :  { %v787_v34 = vpop.eup %590  ;;  %594 = vpow2.f32 %v388_v27  ;;  %v380_v35 = vmul.f32 1.442695, %v361_v33  ;;  %425 = vadd.xlane.f32.xlu1 %v424_v30 }
 0x119   :  { %v412_v37 = vsel %vm67_vm0, %v787_v34, 0.0 }
 0x11a   :  { %596 = vpow2.f32 %v380_v35  ;;  %413 = vadd.xlane.f32.xlu2 %v412_v37 }
 0x11c   :  { %v593_v38 = vpop.eup %592 }
 0x11d   :  { %v324_v39 = vpop.xlane.xlu2 %323  ;;  %v485_v40 = vmul.f32 %v593_v38, %v722_v36  ;;  %v444_v58 = vpop.xlane.xlu1 %443 }
 0x11e   :  { %v792_v41 = vpop.eup %594  ;;  %v362_v42 = vsub.f32 %v738_v53, %v324_v39  ;;  %v312_v43 = vpop.xlane.xlu0 %311 }
 0x11f   :  { %v358_v44 = vsub.f32 %v736_v50, %v312_v43  ;;  %494 = vmatpush.msra.mxu1 %v485_v40  ;;  %v427_v45 = vsel %vm67_vm0, %v792_v41, 0.0 }
 0x120   :  { %v798_v46 = vpop.eup %596  ;;  %v382_v47 = vmul.f32 1.442695, %v362_v42  ;;  %428 = vadd.xlane.f32.xlu0 %v427_v45 }
 0x121   :  { %v374_v49 = vmul.f32 1.442695, %v358_v44  ;;  %v415_v51 = vsel %vm67_vm0, %v798_v46, 0.0 }
 0x122   :  { %598 = vpow2.f32 %v382_v47  ;;  %416 = vadd.xlane.f32.xlu1 %v415_v51  ;;  %v211_v47 = vlaneseq  ;;  %v569_v51 = vld [vmem:[%s888_s3] ss:$0 sm:$0xff] }
 0x123   :  { %600 = vpow2.f32 %v374_v49 }
 0x125   :  { %v315_v36 = vpop.xlane.xlu2 %314  ;;  %v435_v3 = vpop.xlane.xlu1 %434 }
 0x126   :  { %v359_v52 = vsub.f32 %v750_v62, %v315_v36  ;;  %v447_v54 = vpop.xlane.xlu0 %446 }
 0x128   :  { %v803_v53 = vpop.eup %598  ;;  %v376_v50 = vmul.f32 1.442695, %v359_v52 }
 0x129   :  { %v805_v55 = vpop.eup %600  ;;  %v418_v56 = vsel %vm67_vm0, %v803_v53, 0.0 }
 0x12a   :  { %602 = vpow2.f32 %v376_v50  ;;  %419 = vadd.xlane.f32.xlu0 %v418_v56  ;;  %v406_v57 = vsel %vm67_vm0, %v805_v55, 0.0 }
 0x12b   :  { %407 = vadd.xlane.f32.xlu1 %v406_v57  ;;  %604 = vrcp.f32 %v447_v54 }
 0x12d   :  { %v450_v59 = vpop.xlane.xlu2 %449 }
 0x12e   :  { %606 = vrcp.f32 %v450_v59  ;;  %v438_v0 = vpop.xlane.xlu0 %437 }
 0x12f   :  { %608 = vrcp.f32 %v444_v58 }
 0x130   :  { %v811_v62 = vpop.eup %602  ;;  %610 = vrcp.f32 %v438_v0 }
 0x131   :  { %v409_v63 = vsel %vm67_vm0, %v811_v62, 0.0  ;;  %v605_v1 = vpop.eup %604 }
 0x132   :  { %410 = vadd.xlane.f32.xlu0 %v409_v63  ;;  %v483_v9 = vmul.f32 %v605_v1, %v748_v61 }
 0x134   :  { %v607_v2 = vpop.eup %606 }
 0x135   :  { %v441_v4 = vpop.xlane.xlu2 %440  ;;  %v484_v7 = vmul.f32 %v607_v2, %v758_v5  ;;  %v609_v8 = vpop.eup %608 }
 0x136   :  { %612 = vrcp.f32 %v441_v4  ;;  %v482_v10 = vmul.f32 %v609_v8, %v734_v48  ;;  %v611_v12 = vpop.eup %610  ;;  %v82_v48 = vld [vmem:[%s886_s0 + $0x58] sm:$0xff] }
 0x137   :  { %495 = vmatpush.msra.mxu1 %v484_v7  ;;  %614 = vrcp.f32 %v435_v3  ;;  %v480_v5 = vmul.f32 %v611_v12, %v760_v6  ;;  %548 = vmatmul.msk.f32.vlgmr.msra.gmra.mxu3 %vm95_vm1, %v82_v48  ;;  %v84_v6 = vld [vmem:[%s886_s0 + $0x68] sm:$0xff] }
 0x139   :  { %496 = vmatpush.msra.mxu1 %v483_v9 }
 0x13b   :  { %497 = vmatpush.msra.mxu1 %v482_v10 }
 0x13c   :  { %v613_v14 = vpop.eup %612 }
 0x13d   :  { %v432_v15 = vpop.xlane.xlu2 %431  ;;  %v481_v16 = vmul.f32 %v613_v14, %v766_v11  ;;  %v615_v17 = vpop.eup %614  ;;  %v83_v11 = vld [vmem:[%s886_s0 + $0x60] sm:$0xff] }
 0x13e   :  { %616 = vrcp.f32 %v432_v15  ;;  %v479_v18 = vmul.f32 %v615_v17, %v746_v60  ;;  %v79_v60 = vld [vmem:[%s886_s0 + $0x40] sm:$0xff] }
 0x13f   :  { %498 = vmatpush.msra.mxu1 %v481_v16  ;;  %549 = vmatmul.msk.f32.gmra.mxu3 %vm95_vm1, %v83_v11 }
 0x140   :  { %545 = vmatmul.msk.f32.gmra.mxu2 %vm95_vm1, %v79_v60 }
 0x141   :  { %499 = vmatpush.msra.mxu1 %v480_v5 }
 0x143   :  { %500 = vmatpush.msra.mxu1 %v479_v18 }
 0x144   :  { %v617_v61 = vpop.eup %616 }
 0x145   :  { %v478_v20 = vmul.f32 %v617_v61, %v770_v13  ;;  %v80_v13 = vld [vmem:[%s886_s0 + $0x48] sm:$0xff] }
 0x147   :  { %501 = vmatpush.msra.mxu1 %v478_v20  ;;  %550 = vmatmul.msk.f32.gmra.mxu3 %vm95_vm1, %v84_v6 }
 0x148   :  { %546 = vmatmul.msk.f32.gmra.mxu2 %vm95_vm1, %v80_v13 }
 0x14f   :  { %551 = vmatmul.msk.f32.gmra.mxu3 %vm95_vm1, %v85_v21 }
 0x150   :  { %547 = vmatmul.msk.f32.gmra.mxu2 %vm95_vm1, %v81_v26 }
 0x157   :  { %552 = vmatmul.msk.f32.gmra.mxu3 %vm95_vm1, %v86_v28 }
 0x183   :  { %v423_v24 = vpop.xlane.xlu2 %422 }
 0x18b   :  { %v426_v23 = vpop.xlane.xlu1 %425 }
 0x18c   :  { %618 = vrcp.f32 %v426_v23 }
 0x18d   :  { %v414_v30 = vpop.xlane.xlu2 %413 }
 0x192   :  { %v619_v29 = vpop.eup %618 }
 0x193   :  { %v429_v25 = vpop.xlane.xlu0 %428  ;;  %v476_v37 = vmul.f32 %v619_v29, %v782_v32 }
 0x194   :  { %620 = vrcp.f32 %v429_v25 }
 0x195   :  { %622 = vrcp.f32 %v423_v24  ;;  %v417_v19 = vpop.xlane.xlu1 %416 }
 0x196   :  { %624 = vrcp.f32 %v417_v19 }
 0x19a   :  { %v621_v31 = vpop.eup %620 }
 0x19b   :  { %v477_v27 = vmul.f32 %v621_v31, %v792_v41  ;;  %v623_v33 = vpop.eup %622 }
 0x19c   :  { %v475_v38 = vmul.f32 %v623_v33, %v776_v22  ;;  %v625_v40 = vpop.eup %624  ;;  %v212_v22 = vshrl.u32 %v211_v47, 7 }
 0x19d   :  { %502 = vmatpush.msra.mxu1 %v477_v27  ;;  %v420_v35 = vpop.xlane.xlu0 %419  ;;  %v473_v45 = vmul.f32 %v625_v40, %v798_v46  ;;  %v635_v46 = vmov 1.0  }
 0x19e   :  { %626 = vrcp.f32 %v420_v35  ;;  %v408_v39 = vpop.xlane.xlu1 %407  ;;  %vm488_vm2 = vcmp.eq.s32.totalorder %v212_v22, %v569_v51  ;;  %v213_v50 = vadd.s32 8, %v212_v22 }
 0x19f   :  { %503 = vmatpush.msra.mxu1 %v476_v37  ;;  %628 = vrcp.f32 %v414_v30 }
 0x1a0   :  { %630 = vrcp.f32 %v408_v39  ;;  %vm489_vm3 = vcmp.eq.s32.totalorder %v213_v50, %v569_v51 }
 0x1a1   :  { %504 = vmatpush.msra.mxu1 %v475_v38 }
 0x1a4   :  { %v627_v42 = vpop.eup %626 }
 0x1a5   :  { %v411_v43 = vpop.xlane.xlu0 %410  ;;  %v474_v41 = vmul.f32 %v627_v42, %v803_v53  ;;  %v629_v44 = vpop.eup %628 }
 0x1a6   :  { %632 = vrcp.f32 %v411_v43  ;;  %v472_v32 = vmul.f32 %v629_v44, %v787_v34  ;;  %v631_v49 = vpop.eup %630  ;;  %v636_v34 = vmov 0.0  }
 0x1a7   :  { %505 = vmatpush.msra.mxu1 %v474_v41  ;;  %v470_v53 = vmul.f32 %v631_v49, %v805_v55  ;;  %68 = vst.msk [vmem:[%s889_s4] sm:$0xff] %vm67_vm0, %v636_v34 }
 0x1a8   :  { %70 = vst.msk [vmem:[%s889_s4 + $0x8] sm:$0x3] %vm69_vm4, %v636_v34 }
 0x1a9   :  { %506 = vmatpush.msra.mxu1 %v473_v45 }
 0x1ab   :  { %507 = vmatpush.msra.mxu1 %v472_v32 }
 0x1ac   :  { %v633_v36 = vpop.eup %632 }
 0x1ad   :  { %v471_v52 = vmul.f32 %v633_v36, %v811_v62 }
 0x1ae   :  { %v517_v0 = vld [vmem:[%s889_s4] sm:$0xff] }
 0x1af   :  { %508 = vmatpush.msra.mxu1 %v471_v52  ;;  %v518_v3 = vld [vmem:[%s889_s4 + $0x8] sm:$0x3] }
 0x1b1   :  { %509 = vmatpush.msra.mxu1 %v470_v53 }
 0x1b2   :  { %555 = vmatmul.msk.f32.vlgmr.msra.gmra.mxu1 %vm488_vm2, %v635_v46 }
 0x1ba   :  { %556 = vmatmul.msk.f32.gmra.mxu1 %vm489_vm3, %v635_v46  ;;  %v194_v54 = vpop.f32.mrf.mxu3 }
 0x1c2   :  { %v197_v56 = vpop.f32.mrf.mxu3 }
 0x1c3   :  { %v185_v57 = vpop.f32.mrf.mxu2 }
 0x1ca   :  { %v200_v58 = vpop.f32.mrf.mxu3 }
 0x1cb   :  { %v188_v55 = vpop.f32.mrf.mxu2 }
 0x1d2   :  { %v203_v59 = vpop.f32.mrf.mxu3 }
 0x1d3   :  { %v191_v62 = vpop.f32.mrf.mxu2 }
 0x1da   :  { %v206_v63 = vpop.f32.mrf.mxu3 }
 0x22f   :  { %v511_v1 = vpop.f32.mrf.mxu1 }
 0x230   :  { %v519_v2 = vadd.f32 %v517_v0, %v511_v1 }
 0x232   :  { %521 = vst.msk [vmem:[%s889_s4] sm:$0xff] %vm67_vm0, %v519_v2 }
 0x237   :  { %v514_v4 = vpop.f32.mrf.mxu1 }
 0x238   :  { %v520_v7 = vadd.f32 %v518_v3, %v514_v4 }
 0x23a   :  { %523 = vst.msk [vmem:[%s889_s4 + $0x8] sm:$0x3] %vm69_vm4, %v520_v7 }

</bundles_post_ra>
